<compile_context>
chip_gen: v7x
topology: tpu7x:2x2x1
jax: 0.10.0
libtpu: 0.0.40
codegen_flags: <defaults>
</compile_context>

<pallas_src>
import jax
import jax.numpy as jnp
from jax.experimental import pallas as pl
from jax.experimental.pallas import tpu as pltpu

LANE = 128
MAX_BLOCK_ROWS = 2048   # (2048, 128) f32 block = 1 MiB; safe on v5e/v6e/v7x
NCORES = 2              # leading "parallel" axis; sharded across TCs on v7x


def _cdiv(a, b):
    return (a + b - 1) // b


def _round_up(a, b):
    return _cdiv(a, b) * b


def _dice_bce_kernel(x_ref, t_ref, part_ref):
    """part_ref block (1, 4, LANE): rows = [intersection, sum_x, sum_t, bce_sum]."""
    i = pl.program_id(1)

    @pl.when(i == 0)
    def _():
        part_ref[...] = jnp.zeros_like(part_ref)

    x = x_ref[...].astype(jnp.float32)
    t = t_ref[...].astype(jnp.float32)

    # Dice partial sums (sublane reduction -> (1, LANE)).
    inter = jnp.sum(x * t, axis=0, keepdims=True)
    sx = jnp.sum(x, axis=0, keepdims=True)
    st = jnp.sum(t, axis=0, keepdims=True)

    # Binary cross entropy; PyTorch clamps log(p) at -100, reproduce that.
    # Padded zeros give -(0*(-100) + 1*log(1)) == 0, so padding is harmless.
    log_p = jnp.maximum(jnp.log(x), -100.0)
    log_1mp = jnp.maximum(jnp.log(1.0 - x), -100.0)
    bce_elem = -(t * log_p + (1.0 - t) * log_1mp)
    bce = jnp.sum(bce_elem, axis=0, keepdims=True)

    partial = jnp.concatenate([inter, sx, st, bce], axis=0)  # (4, LANE)
    part_ref[...] += partial[None, :, :]


def dice_bce_loss(inputs, targets, smooth=1.0):
    """Pallas implementation of DiceBCELoss.forward (returns a scalar)."""
    x = inputs.reshape(-1)
    t = targets.reshape(-1)
    n = x.shape[0]

    # Tiling: rows of 128 lanes, split across NCORES, blocks of block_rows.
    rows_needed = _cdiv(n, LANE)
    rows_per_core = _cdiv(rows_needed, NCORES)
    block_rows = min(MAX_BLOCK_ROWS, _round_up(rows_per_core, 8))
    steps = _cdiv(rows_per_core, block_rows)
    padded_rows = NCORES * steps * block_rows
    pad = padded_rows * LANE - n
    if pad:
        # Zero padding contributes exactly 0 to every partial sum (incl. BCE),
        # so no mask stream is needed.  Skipped entirely when n tiles evenly.
        x = jnp.pad(x, (0, pad))
        t = jnp.pad(t, (0, pad))
    x2 = x.reshape(padded_rows, LANE)
    t2 = t.reshape(padded_rows, LANE)

    in_blk = pl.BlockSpec((block_rows, LANE), lambda c, i: (c * steps + i, 0))
    out_blk = pl.BlockSpec((1, 4, LANE), lambda c, i: (c, 0, 0))

    parts = pl.pallas_call(
        _dice_bce_kernel,
        out_shape=jax.ShapeDtypeStruct((NCORES, 4, LANE), jnp.float32),
        grid_spec=pltpu.PrefetchScalarGridSpec(
            num_scalar_prefetch=0,
            grid=(NCORES, steps),
            in_specs=[in_blk, in_blk],
            out_specs=out_blk,
        ),
        compiler_params=pltpu.CompilerParams(
            dimension_semantics=("parallel", "arbitrary")),
    )(x2, t2)

    # Tiny finalize outside the kernel (combines the per-core partials).
    sums = jnp.sum(parts, axis=(0, 2))  # (4,)
    intersection, sum_x, sum_t, bce_sum = sums[0], sums[1], sums[2], sums[3]
    smooth_f = jnp.float32(smooth)
    dice_loss = 1.0 - (2.0 * intersection + smooth_f) / (sum_x + sum_t + smooth_f)
    bce_mean = bce_sum / jnp.float32(n)
    return bce_mean + dice_loss


def _reference(inputs, targets, smooth=1.0):
    x = inputs.reshape(-1).astype(jnp.float32)
    t = targets.reshape(-1).astype(jnp.float32)
    intersection = jnp.sum(x * t)
    dice = 1.0 - (2.0 * intersection + smooth) / (jnp.sum(x) + jnp.sum(t) + smooth)
    log_p = jnp.maximum(jnp.log(x), -100.0)
    log_1mp = jnp.maximum(jnp.log(1.0 - x), -100.0)
    bce = jnp.mean(-(t * log_p + (1.0 - t) * log_1mp))
    return bce + dice


if __name__ == "__main__":
    key = jax.random.PRNGKey(0)
    k1, k2 = jax.random.split(key)
    # NCHW, same convention as the PyTorch module's usage.
    shape = (2, 4, 16, 16)
    inputs = jax.nn.sigmoid(jax.random.normal(k1, shape, dtype=jnp.float32))
    targets = jax.random.bernoulli(k2, 0.5, shape).astype(jnp.float32)

    loss = jax.block_until_ready(dice_bce_loss(inputs, targets, smooth=1.0))
    ref = jax.block_until_ready(_reference(inputs, targets, smooth=1.0))
    assert jnp.allclose(loss, ref, rtol=1e-5, atol=1e-5), (loss, ref)

    print("KERNEL_OK")
</pallas_src>

<mosaic_0001>
module attributes {stable_mosaic.version = 11 : i64} {
  func.func @_dice_bce_kernel(%arg0: i32, %arg1: i32, %arg2: memref<8x128xf32, #tpu.memory_space<vmem>>, %arg3: memref<8x128xf32, #tpu.memory_space<vmem>>, %arg4: memref<1x4x128xf32, #tpu.memory_space<vmem>>) attributes {dimension_semantics = [#tpu.dimension_semantics<parallel>, #tpu.dimension_semantics<arbitrary>], iteration_bounds = array<i64: 2, 1>, scalar_prefetch = 0 : i64, scratch_operands = 0 : i64, tpu.core_type = #tpu.core_type<tc>, window_params = [{transform_indices = @transform_0, window_bounds = array<i64: 8, 128>}, {transform_indices = @transform_1, window_bounds = array<i64: 8, 128>}, {transform_indices = @transform_2, window_bounds = array<i64: 1, 4, 128>}]} {
    %c0_i32 = arith.constant 0 : i32
    %0 = arith.cmpi eq, %arg1, %c0_i32 : i32
    %1 = arith.extui %0 : i1 to i32
    %c0_i32_0 = arith.constant 0 : i32
    %2 = arith.cmpi ne, %1, %c0_i32_0 : i32
    scf.if %2 {
      %cst_18 = arith.constant 0.000000e+00 : f32
      %34 = vector.broadcast %cst_18 : f32 to vector<1x4x128xf32>
      %c0_19 = arith.constant 0 : index
      %c0_20 = arith.constant 0 : index
      %c0_21 = arith.constant 0 : index
      %35 = vector.load %arg4[%c0_19, %c0_20, %c0_21] : memref<1x4x128xf32, #tpu.memory_space<vmem>>, vector<1x4x128xf32>
      tpu.vector_store %arg4[%c0_19, %c0_20, %c0_21], %34 {strides = array<i32>} : memref<1x4x128xf32, #tpu.memory_space<vmem>>, vector<1x4x128xf32>,
    } else {
    }
    %c0 = arith.constant 0 : index
    %c0_1 = arith.constant 0 : index
    %3 = vector.load %arg2[%c0, %c0_1] : memref<8x128xf32, #tpu.memory_space<vmem>>, vector<8x128xf32>
    %c0_2 = arith.constant 0 : index
    %c0_3 = arith.constant 0 : index
    %4 = vector.load %arg3[%c0_2, %c0_3] : memref<8x128xf32, #tpu.memory_space<vmem>>, vector<8x128xf32>
    %5 = arith.mulf %3, %4 : vector<8x128xf32>
    %cst = arith.constant dense<0.000000e+00> : vector<128xf32>
    %6 = vector.multi_reduction <add>, %5, %cst [0] : vector<8x128xf32> to vector<128xf32>
    %7 = vector.shape_cast %6 : vector<128xf32> to vector<1x128xf32>
    %cst_4 = arith.constant dense<0.000000e+00> : vector<128xf32>
    %8 = vector.multi_reduction <add>, %3, %cst_4 [0] : vector<8x128xf32> to vector<128xf32>
    %9 = vector.shape_cast %8 : vector<128xf32> to vector<1x128xf32>
    %cst_5 = arith.constant dense<0.000000e+00> : vector<128xf32>
    %10 = vector.multi_reduction <add>, %4, %cst_5 [0] : vector<8x128xf32> to vector<128xf32>
    %11 = vector.shape_cast %10 : vector<128xf32> to vector<1x128xf32>
    %12 = math.log %3 : vector<8x128xf32>
    %cst_6 = arith.constant -1.000000e+02 : f32
    %13 = vector.broadcast %cst_6 : f32 to vector<8x128xf32>
    %14 = arith.maximumf %12, %13 : vector<8x128xf32>
    %cst_7 = arith.constant 1.000000e+00 : f32
    %15 = vector.broadcast %cst_7 : f32 to vector<8x128xf32>
    %16 = arith.subf %15, %3 : vector<8x128xf32>
    %17 = math.log %16 : vector<8x128xf32>
    %cst_8 = arith.constant -1.000000e+02 : f32
    %18 = vector.broadcast %cst_8 : f32 to vector<8x128xf32>
    %19 = arith.maximumf %17, %18 : vector<8x128xf32>
    %20 = arith.mulf %4, %14 : vector<8x128xf32>
    %cst_9 = arith.constant 1.000000e+00 : f32
    %21 = vector.broadcast %cst_9 : f32 to vector<8x128xf32>
    %22 = arith.subf %21, %4 : vector<8x128xf32>
    %23 = arith.mulf %22, %19 : vector<8x128xf32>
    %24 = arith.addf %20, %23 : vector<8x128xf32>
    %cst_10 = arith.constant 0.000000e+00 : f32
    %25 = vector.broadcast %cst_10 : f32 to vector<8x128xf32>
    %26 = arith.subf %25, %24 : vector<8x128xf32>
    %cst_11 = arith.constant dense<0.000000e+00> : vector<128xf32>
    %27 = vector.multi_reduction <add>, %26, %cst_11 [0] : vector<8x128xf32> to vector<128xf32>
    %28 = vector.shape_cast %27 : vector<128xf32> to vector<1x128xf32>
    %29 = tpu.concatenate %7, %9, %11, %28 in 0 : vector<1x128xf32>, vector<1x128xf32>, vector<1x128xf32>, vector<1x128xf32> -> vector<4x128xf32>
    %c0_12 = arith.constant 0 : index
    %c0_13 = arith.constant 0 : index
    %c0_14 = arith.constant 0 : index
    %30 = vector.load %arg4[%c0_12, %c0_13, %c0_14] : memref<1x4x128xf32, #tpu.memory_space<vmem>>, vector<1x4x128xf32>
    %31 = vector.shape_cast %29 : vector<4x128xf32> to vector<1x4x128xf32>
    %32 = arith.addf %30, %31 : vector<1x4x128xf32>
    %c0_15 = arith.constant 0 : index
    %c0_16 = arith.constant 0 : index
    %c0_17 = arith.constant 0 : index
    %33 = vector.load %arg4[%c0_15, %c0_16, %c0_17] : memref<1x4x128xf32, #tpu.memory_space<vmem>>, vector<1x4x128xf32>
    tpu.vector_store %arg4[%c0_15, %c0_16, %c0_17], %32 {strides = array<i32>} : memref<1x4x128xf32, #tpu.memory_space<vmem>>, vector<1x4x128xf32>,
    return
  }
  func.func @transform_0(%arg0: i32, %arg1: i32) -> (i32, i32) {
    %c1_i32 = arith.constant 1 : i32
    %0 = arith.muli %arg0, %c1_i32 : i32
    %1 = arith.addi %0, %arg1 : i32
    %c0_i32 = arith.constant 0 : i32
    %c0_i32_0 = arith.constant 0 : i32
    return %1, %c0_i32 : i32, i32
  }
  func.func @transform_1(%arg0: i32, %arg1: i32) -> (i32, i32) {
    %c1_i32 = arith.constant 1 : i32
    %0 = arith.muli %arg0, %c1_i32 : i32
    %1 = arith.addi %0, %arg1 : i32
    %c0_i32 = arith.constant 0 : i32
    %c0_i32_0 = arith.constant 0 : i32
    return %1, %c0_i32 : i32, i32
  }
  func.func @transform_2(%arg0: i32, %arg1: i32) -> (i32, i32, i32) {
    %c0_i32 = arith.constant 0 : i32
    %c0_i32_0 = arith.constant 0 : i32
    %c0_i32_1 = arith.constant 0 : i32
    return %arg0, %c0_i32, %c0_i32_0 : i32, i32, i32
  }
}

</mosaic_0001>

<bundles_post_ra>
// kernel: tpu_custom_call.1
= control target key start
LH: loop header
LB: loop body
LE: loop exit
PB: predicated region body
PF: predicated region fallthrough
CT: control target
= control target key end

     0   :  { %7 = vsyncpa [#allocation3], 0  ;;  %s868_s0 = inlined_call_operand.hbm [shape: f32[16,128], index: 0, kind: input, shape index: {}]   ;;  %s869_s1 = inlined_call_operand.hbm [shape: f32[16,128], index: 1, kind: input, shape index: {}]   ;;  %s870_s2 = inlined_call_operand.hbm [shape: f32[2,4,128], index: 2, kind: output, shape index: {}]  }
   0x1   :  { %9 = vsyncpa [#allocation3 + $0x1], 0 }
   0x2   :  { %10 = vsyncpa [#allocation6], 0 }
   0x3   :  { %12 = vsyncpa [#allocation6 + $0x1], 0 }
   0x4   :  { %13 = vsyncpa [#allocation4], 0 }
   0x5   :  { %15 = vsyncpa [#allocation4 + $0x1], 0  ;;  %s641_s9 = smov 0   ;;  %s643_s10 = smov 0  }
   0x6   :  { %s645_s11 = smov 0   ;;  %s647_s12 = smov 0  }
   0x7   :  { %s649_s13 = smov 0   ;;  %s651_s14 = smov 0  }
   0x8 LB: > { %s386_s15 = sadd.s32 4294967295, %s620_s14   ;;  %s387_s16 = sadd.s32 4294967294, %s620_s14   ;;  %s620_s14 = sphi %s651_s14, %s21_s14   ;;  %s616_s13 = sphi %s649_s13, %s890_s13   ;;  %s612_s12 = sphi %s647_s12, %s889_s12   ;;  %s608_s11 = sphi %s645_s11, %s888_s11   ;;  %s604_s10 = sphi %s643_s10, %s887_s10   ;;  %s600_s9 = sphi %s641_s9, %s886_s9  }
   0x9   : > { %s33_s17 = sadd.s32 1, %s616_s13  ;;  %s42_s18 = sadd.s32 1, %s608_s11 }
   0xa   : > { %p35_p0 = scmp.ge.s32.totalorder %s33_s17, 2  ;;  %p49_p1 = scmp.ne.s32.totalorder %s608_s11, %s604_s10 }
   0xb   : > { %p50_p2 = scmp.eq.s32.totalorder %s620_s14, 0  ;;  %p55_p3 = scmp.ne.s32.totalorder %s604_s10, %s600_s9 }
   0xc   : > { %s892_s17 = smov (%p35_p0, %s33_s17), 0  ;;  %p56_p5 = scmp.eq.s32.totalorder %s386_s15, 0 }
   0xd   : > { %p682_p4 = por %p50_p2, %p49_p1  ;;  %s39_s20 = ssub.s32 %s616_s13, %s892_s17 }
   0xe   : > { %p107_p6 = scmp.eq.s32.totalorder %s386_s15, 1  ;;  %p40_p7 = scmp.eq.s32.totalorder %s39_s20, 0 }
   0xf   : > { %p688_p8 = por %p56_p5, %p55_p3  ;;  %p113_p10 = scmp.eq.s32.totalorder %s387_s16, 1 }
  0x10   : > { %p692_p9 = por %p107_p6, %p49_p1  ;;  %p419_p13 = scmp.lt.s32.totalorder %s620_s14, 2 }
  0x11   : > { %s874_s21 = scalar_select %p688_p8, 1, 0 }
  0x12   : > { %s875_s22 = scalar_select %p692_p9, 1, 0 }
  0x13   : > { %s697_s23 = scalar_select %p40_p7, %s608_s11, %s42_s18  }
  0x14   : > { %p699_p11 = por %p113_p10, %p55_p3  ;;  %s706_s25 = sand.u32 1, %s608_s11  }
  0x15   : > { %s390_s26 = sshll.u32 %s706_s25, 3  ;;  %s391_s27 = sshll.u32 %s616_s13, 7 }
  0x16   : > { %s876_s24 = scalar_select %p699_p11, 1, 0 }
  0x17   : > { %s715_s30 = scalar_lea.hbm %s868_s0, %s391_s27  ;;  %s137_s3 = scalar_lea.vmem [#allocation2], %s390_s26 }
  0x18   : > { %s145_s4 = sshll.u32 %s137_s3, 4  ;;  %p723_p0 = pnand %p419_p13, %p682_p4  ;;  %s719_s4 = int_to_ptr.vmem [resolvable:$true] %s145_s4 }
  0x19   : > { %s134_s6 = scalar_lea.sflag [#allocation3], %s706_s25  ;;  %s474_s7 = scalar_lea.hbm %s715_s30, 128 }
  0x1a   : > { %p475_p3 = scmp.ne.s32.totalorder %s715_s30, %s474_s7  ;;  %p476_p5 = pneg %p723_p0 }
  0x1b   : > { %s479_s16 = scalar_lea.hbm %s868_s0, 256  ;;  %p480_p4 = scmp.lt.u32.totalorder %s715_s30, %s868_s0 }
  0x1c   : > { %p477_p6 = pnand %p476_p5, %p475_p3  ;;  %p481_p10 = scmp.lt.u32.totalorder %s479_s16, %s474_s7 }
  0x1d   : > { %p483_p12 = scmp.lt.u32.totalorder %s474_s7, %s715_s30 }
  0x1e   : > { %p478_p7 = pneg %p477_p6  ;;  %p482_p13 = por %p481_p10, %p480_p4 }
  0x20   : > { %p484_p1 = por %p483_p12, %p482_p13 }
  0x22   : > { %p485_p2 = pnand %p484_p1, %p478_p7 }
  0x24   : > { %488 = shalt.err (!%p485_p2)
}
  0x25   : > { %s489_s20 = scalar_lea.vmem %s719_s4, 128  ;;  %s622_s28 = smov [#allocation2]  }
  0x26   : > { %p490_p3 = scmp.ne.s32.totalorder %s719_s4, %s489_s20  ;;  %s494_s29 = sshll.u32 %s622_s28, 4  ;;  %s495_s29 = int_to_ptr.vmem [resolvable:$false] %s494_s29 }
  0x27   : > { %s496_s3 = scalar_lea.vmem %s495_s29, 256  ;;  %p497_p9 = scmp.lt.s32.totalorder %s719_s4, %s495_s29 }
  0x28   : > { %p492_p6 = pnand %p490_p3, %p476_p5  ;;  %p498_p4 = scmp.lt.s32.totalorder %s496_s3, %s489_s20 }
  0x2a   : > { %p493_p11 = pneg %p492_p6  ;;  %p499_p10 = por %p498_p4, %p497_p9 }
  0x2c   : > { %p500_p12 = pnand %p499_p10, %p493_p11 }
  0x2e   : > { %503 = shalt.err (!%p500_p12)
}
  0x2f   : > { %411 = dma.hbm_to_vmem [thread:$0]  (!%p723_p0), %s715_s30, 128, %s719_s4, %s134_s6  }
  0x30   : > { %p878_p1 = scmp.lt.s32.totalorder %s620_s14, 3  ;;  %p879_p2 = scmp.ge.s32.totalorder %s620_s14, 1 }
  0x31   : > { %s768_s16 = scalar_lea.hbm %s869_s1, %s391_s27  ;;  %s156_s18 = scalar_lea.vmem [#allocation5], %s390_s26 }
  0x32   : > { %p759_p7 = pnand %p879_p2, %p878_p1  ;;  %s164_s19 = sshll.u32 %s156_s18, 4  ;;  %s165_s19 = int_to_ptr.vmem [resolvable:$true] %s164_s19 }
  0x33   : > { %s153_s30 = scalar_lea.sflag [#allocation6], %s706_s25  ;;  %s504_s4 = scalar_lea.hbm %s768_s16, 128 }
  0x34   : > { %s880_s7 = scalar_select %p759_p7, 1, 0 }
  0x35   : > { %p505_p9 = scmp.ne.s32.totalorder %s768_s16, %s504_s4  ;;  %s509_s27 = scalar_lea.hbm %s869_s1, 256 }
  0x36   : > { %p510_p3 = scmp.lt.u32.totalorder %s768_s16, %s869_s1  ;;  %p511_p6 = scmp.lt.u32.totalorder %s509_s27, %s504_s4 }
  0x37   : > { %p507_p11 = pnand %p505_p9, %p476_p5  ;;  %p513_p10 = scmp.lt.u32.totalorder %s504_s4, %s768_s16 }
  0x38   : > { %p512_p4 = por %p511_p6, %p510_p3 }
  0x39   : > { %p508_p13 = pneg %p507_p11 }
  0x3a   : > { %p514_p12 = por %p513_p10, %p512_p4 }
  0x3c   : > { %p515_p1 = pnand %p514_p12, %p508_p13 }
  0x3e   : > { %518 = shalt.err (!%p515_p1)
}
  0x3f   : > { %s519_s25 = scalar_lea.vmem %s165_s19, 128  ;;  %s623_s26 = smov [#allocation5]  }
  0x40   : > { %p520_p2 = scmp.ne.s32.totalorder %s165_s19, %s519_s25  ;;  %s524_s3 = sshll.u32 %s623_s26, 4  ;;  %s525_s3 = int_to_ptr.vmem [resolvable:$false] %s524_s3 }
  0x41   : > { %s526_s8 = scalar_lea.vmem %s525_s3, 256  ;;  %p527_p8 = scmp.lt.s32.totalorder %s165_s19, %s525_s3 }
  0x42   : > { %p522_p9 = pnand %p520_p2, %p476_p5  ;;  %p528_p7 = scmp.lt.s32.totalorder %s526_s8, %s519_s25 }
  0x44   : > { %p523_p11 = pneg %p522_p9  ;;  %p529_p3 = por %p528_p7, %p527_p8 }
  0x46   : > { %p530_p6 = pnand %p529_p3, %p523_p11 }
  0x48   : > { %533 = shalt.err (!%p530_p6)
}
  0x49   : > { %414 = dma.hbm_to_vmem [thread:$0]  (!%p723_p0), %s768_s16, 128, %s165_s19, %s153_s30  }
  0x4a   : > { %p881_p13 = scmp.ne.s32.totalorder %s880_s7, 0 }
  0x4b   : > { %s795_s15 = sand.u32 (!%p881_p13), 1, %s604_s10   ;;  %p882_p5 = scmp.ne.s32.totalorder (!%p881_p13), %s874_s21, 0 }
  0x4c   : > { %173 = sbr.rel (%p881_p13) target bundleno = 139 (0x8b), region = 28  ;;  %s395_s18 = sshll.u32 (!%p881_p13), %s795_s15, 3 }
  0x4d   : > { %s176_s4 = scalar_lea.sflag (!%p881_p13), [#allocation3], %s795_s15  ;;  %s179_s6 = scalar_lea.vmem (!%p881_p13), [#allocation2], %s395_s18 }
  0x53   : > { %587 = dma.done.wait (%p882_p5), %s176_s4, 128  }
  0x54   : > { %589 = vsyncadd (%p882_p5), %s176_s4, 4294967168  ;;  %s185_s5 = scalar_lea.sflag [#allocation6], %s795_s15  ;;  %s188_s16 = scalar_lea.vmem [#allocation5], %s395_s18 }
  0x55   : > { %591 = dma.done.wait (%p882_p5), %s185_s5, 128  }
  0x56   : > { %593 = vsyncadd (%p882_p5), %s185_s5, 4294967168  ;;  %s397_s7 = sshll.u32 %s795_s15, 2  ;;  %v624_v0 = vmov 0.0   ;;  %v221_v1 = vld [vmem:[%s179_s6] sm:$0xff]  ;;  %v222_v2 = vld [vmem:[%s188_s16] sm:$0xff]  ;;  %vm260_vm0 = vcmask 1040384  }
  0x57   : > { %s809_s19 = scalar_lea.vmem [#allocation7], %s397_s7  ;;  %470 = vlog2.f32 %v221_v1  ;;  %v245_v3 = vsub.f32 1.0, %v221_v1  ;;  %v223_v4 = vmul.f32 %v222_v2, %v221_v1  ;;  %v230_v6 = vrot.slane %v221_v1, 4  ;;  %s399_s21 = sshll.u32 %s612_s12, 6 }
  0x58   : > { %220 = vst [vmem:[%s809_s19] sm:$0xf] %v624_v0  ;;  %v236_v7 = vrot.slane %v222_v2, 4  ;;  %v250_v18 = vsub.f32 1.0, %v222_v2  ;;  %vm262_vm1 = vcmask 1041408   ;;  %vm264_vm2 = vcmask 1042432   ;;  %s283_s30 = sshll.u32 %s809_s19, 4  ;;  %s818_s28 = scalar_lea.hbm %s870_s2, %s399_s21  ;;  %s820_s30 = int_to_ptr.vmem [resolvable:$true] %s283_s30 }
  0x59   : > { %472 = vlog2.f32 %v245_v3  ;;  %v224_v5 = vrot.slane %v223_v4, 4  ;;  %v231_v10 = vadd.f32 %v230_v6, %v221_v1  ;;  %s270_s29 = scalar_lea.sflag [#allocation4], %s795_s15  ;;  %s534_s25 = scalar_lea.vmem %s820_s30, 64 }
  0x5a   : > { %v237_v13 = vadd.f32 %v236_v7, %v222_v2  ;;  %p535_p8 = scmp.ne.s32.totalorder %s820_s30, %s534_s25  ;;  %p883_p0 = scmp.ne.s32.totalorder %s875_s22, 0 }
  0x5b   : > { %v225_v9 = vadd.f32 %v224_v5, %v223_v4  ;;  %v232_v16 = vrot.slane %v231_v10, 2  ;;  %s625_s12 = smov [#allocation7]  }
  0x5c   : > { %v238_v21 = vrot.slane %v237_v13, 2  ;;  %p536_p7 = pnand %p535_p8, %p883_p0  ;;  %s538_s26 = sshll.u32 %s625_s12, 4  ;;  %s539_s26 = int_to_ptr.vmem [resolvable:$false] %s538_s26 }
  0x5d   : > { %v226_v15 = vrot.slane %v225_v9, 2  ;;  %v233_v23 = vadd.f32 %v232_v16, %v231_v10  ;;  %s540_s3 = scalar_lea.vmem %s539_s26, 128  ;;  %p541_p10 = scmp.lt.s32.totalorder %s820_s30, %s539_s26 }
  0x5e   : > { %v239_v26 = vadd.f32 %v238_v21, %v237_v13  ;;  %p537_p4 = pneg %p536_p7  ;;  %p542_p12 = scmp.lt.s32.totalorder %s540_s3, %s534_s25 }
  0x5f   : > { %v227_v22 = vadd.f32 %v226_v15, %v225_v9  ;;  %v234_v28 = vrot.slane %v233_v23, 1  ;;  %v266_v42 = vld [vmem:[%s809_s19] sm:$0xf] }
  0x60   : > { %v240_v31 = vrot.slane %v239_v26, 1  ;;  %p543_p1 = por %p542_p12, %p541_p10 }
  0x61   : > { %v471_v8 = vpop.eup %470  ;;  %v228_v27 = vrot.slane %v227_v22, 1  ;;  %v235_v33 = vadd.f32 %v234_v28, %v233_v23 }
  0x62   : > { %v243_v11 = vmul.f32 0.6931472, %v471_v8  ;;  %v241_v36 = vadd.f32 %v240_v31, %v239_v26  ;;  %p544_p2 = pnand %p543_p1, %p537_p4 }
  0x63   : > { %v473_v12 = vpop.eup %472  ;;  %v229_v32 = vadd.f32 %v228_v27, %v227_v22 }
  0x64   : > { %v244_v14 = vmax.f32 %v243_v11, -100.0  ;;  %v247_v17 = vmul.f32 0.6931472, %v473_v12 }
  0x65   : > { %v261_v38 = vsel %vm260_vm0, %v229_v32, %v235_v33 }
  0x66   : > { %v248_v19 = vmax.f32 %v247_v17, -100.0  ;;  %v249_v20 = vmul.f32 %v244_v14, %v222_v2  ;;  %v263_v40 = vsel %vm262_vm1, %v261_v38, %v241_v36 }
  0x68   : > { %v251_v24 = vmul.f32 %v250_v18, %v248_v19 }
  0x6a   : > { %v252_v25 = vadd.f32 %v251_v24, %v249_v20 }
  0x6c   : > { %v253_v29 = vsub.f32 0.0, %v252_v25 }
  0x6e   : > { %v254_v30 = vrot.slane %v253_v29, 4 }
  0x70   : > { %v255_v34 = vadd.f32 %v254_v30, %v253_v29 }
  0x72   : > { %v256_v35 = vrot.slane %v255_v34, 2 }
  0x74   : > { %v257_v37 = vadd.f32 %v256_v35, %v255_v34 }
  0x76   : > { %v258_v39 = vrot.slane %v257_v37, 1 }
  0x78   : > { %v259_v41 = vadd.f32 %v258_v39, %v257_v37 }
  0x7a   : > { %v265_v43 = vsel %vm264_vm2, %v263_v40, %v259_v41 }
  0x7b   : > { %v267_v44 = vadd.f32 %v266_v42, %v265_v43 }
  0x7d   : > { %268 = vst [vmem:[%s809_s19] sm:$0xf] %v267_v44 }
  0x7e   : > { %547 = shalt.err (!%p544_p2)
}
  0x7f   : > { %s548_s8 = scalar_lea.hbm %s818_s28, 64  ;;  %s552_s4 = scalar_lea.hbm %s870_s2, 128 }
  0x80   : > { %p549_p9 = scmp.ne.s32.totalorder %s818_s28, %s548_s8  ;;  %p553_p6 = scmp.lt.u32.totalorder %s818_s28, %s870_s2 }
  0x81   : > { %p554_p13 = scmp.lt.u32.totalorder %s552_s4, %s548_s8  ;;  %p556_p8 = scmp.lt.u32.totalorder %s548_s8, %s818_s28 }
  0x82   : > { %p550_p11 = pnand %p549_p9, %p883_p0 }
  0x83   : > { %p555_p5 = por %p554_p13, %p553_p6 }
  0x84   : > { %p551_p3 = pneg %p550_p11 }
  0x85   : > { %p557_p7 = por %p556_p8, %p555_p5 }
  0x87   : > { %p558_p4 = pnand %p557_p7, %p551_p3 }
  0x89   : > { %561 = shalt.err (!%p558_p4)
}
  0x8a   : > { %406 = dma.vmem_to_hbm [thread:$0]  (%p883_p0), %s820_s30, 64, %s818_s28, %s270_s29  }
  0x8b PF: > { %s295_s16 = sand.u32 1, %s600_s9   ;;  %p884_p10 = scmp.ne.s32.totalorder %s876_s24, 0 }
  0x8c   : > { %p885_p12 = scmp.ge.s32.totalorder %s620_s14, 2  ;;  %s296_s7 = scalar_lea.sflag [#allocation4], %s295_s16 }
  0x8e   : > { %p416_p1 = pnand %p885_p12, %p884_p10 }
  0x90   : > { %595 = dma.done.wait (!%p416_p1), %s296_s7, 64  }
  0x91   : > { %597 = vsyncadd (!%p416_p1), %s296_s7, 4294967232  ;;  %s21_s14 = sadd.s32 1, %s620_s14   ;;  %s886_s9 = smov %s604_s10 }
  0x92   : > { %p18_p2 = scmp.ge.s32.totalorder %s21_s14, 4   ;;  %s887_s10 = smov %s608_s11 }
  0x93   : > { %s888_s11 = smov %s697_s23  ;;  %s889_s12 = smov %s616_s13 }
  0x94   : > { %s890_s13 = smov %s892_s17  ;;  %20 = sbr.rel (!%p18_p2) target bundleno = 8 (0x8), region = 90 }
  0x9b   :  { %301 = vsyncpa [#allocation3], 1 }
  0x9c   :  { %303 = vsyncpa [#allocation3 + $0x1], 1 }
  0x9d   :  { %304 = vsyncpa [#allocation6], 1 }
  0x9e   :  { %306 = vsyncpa [#allocation6 + $0x1], 1 }
  0x9f   :  { %307 = vsyncpa [#allocation4], 1 }
  0xa0   :  { %309 = vsyncpa [#allocation4 + $0x1], 1 }

</bundles_post_ra>
